<compile_context>
chip_gen: v5e
topology: v5e:2x2
jax: 0.10.0
libtpu: 0.0.40
codegen_flags: <defaults>
</compile_context>

<pallas_src>
import math
from functools import partial

import numpy as np
import jax
import jax.numpy as jnp
from jax.experimental import pallas as pl
from jax.experimental.pallas import tpu as pltpu


# ----------------------------- constant builders (host-side glue) -----------------------------

def get_freq_indices(method="top16"):
    num_freq = int(method[3:])
    all_top_indices_x = [0, 0, 6, 0, 0, 1, 1, 4, 5, 1, 3, 0, 0, 0, 3, 2,
                         4, 6, 3, 5, 5, 2, 6, 5, 5, 3, 3, 4, 2, 2, 6, 1]
    all_top_indices_y = [0, 1, 0, 5, 2, 0, 2, 0, 0, 6, 0, 4, 6, 3, 5, 2,
                         6, 3, 3, 3, 5, 1, 1, 2, 4, 2, 1, 1, 3, 0, 5, 3]
    assert "top" in method
    return all_top_indices_x[:num_freq], all_top_indices_y[:num_freq]


def _build_filter(pos, freq, POS):
    result = math.cos(math.pi * freq * (pos + 0.5) / POS) / math.sqrt(POS)
    if freq == 0:
        return result
    return result * math.sqrt(2)


def get_dct_filter(tile_size_x, tile_size_y, mapper_x, mapper_y, channel):
    dct_filter = np.zeros((channel, tile_size_x, tile_size_y), dtype=np.float32)
    c_part = channel // len(mapper_x)
    for i, (u_x, v_y) in enumerate(zip(mapper_x, mapper_y)):
        for t_x in range(tile_size_x):
            for t_y in range(tile_size_y):
                value = _build_filter(t_x, u_x, tile_size_x) * _build_filter(t_y, v_y, tile_size_y)
                dct_filter[i * c_part:(i + 1) * c_part, t_x, t_y] = value
    return dct_filter  # (C, dct_h, dct_w)


def adaptive_pool_matrix(in_size, out_size):
    """Row-stochastic matrix reproducing torch adaptive_avg_pool1d bins."""
    P = np.zeros((out_size, in_size), dtype=np.float32)
    for i in range(out_size):
        start = (i * in_size) // out_size
        end = -(-((i + 1) * in_size) // out_size)  # ceil
        P[i, start:end] = 1.0 / (end - start)
    return P


def folded_dct_pool_weight(dct_filter, h, w, dct_h, dct_w):
    """W[c, h*w] = sum_{p,q} dct[c,p,q] * Ph[p,h] * Pw[q,w]  (adaptive pool + DCT folded)."""
    c = dct_filter.shape[0]
    ph = adaptive_pool_matrix(h, dct_h)
    pw = adaptive_pool_matrix(w, dct_w)
    W = np.einsum("cpq,ph,qw->chw", dct_filter, ph, pw).reshape(c, h * w)
    return W.astype(np.float32)


# ----------------------------- Pallas kernel -----------------------------

def msa_kernel(x_ref, w_ref, w1_ref, w2_ref, out_ref):
    # x_ref:   (nb, C, HW)  nb batch elements; HW on lanes
    # w_ref:   (C, HW)      folded adaptive-pool + DCT weight (f32)
    # w1_ref:  (C//r, C)    fc1 weight, native nn.Linear layout (out, in)
    # w2_ref:  (C, C//r)    fc2 weight, native nn.Linear layout (out, in)
    # out_ref: (nb, C, HW)
    x = x_ref[...].astype(jnp.float32)                                   # (nb, C, HW)

    # Pool + DCT-weighted reduction in one shot: VPU multiply + XLU lane reduce (f32 acc).
    y = jnp.sum(x * w_ref[...], axis=-1)                                 # (nb, C)

    # fc: Linear -> ReLU -> Linear -> Sigmoid on the whole batch block.
    # Contraction stays on C / C//r; identical to y @ w1.T and z @ w2.T.
    z = jnp.maximum(
        jax.lax.dot_general(y, w1_ref[...], (((1,), (1,)), ((), ())),
                            preferred_element_type=jnp.float32), 0.0)    # (nb, C//r)
    s = jax.nn.sigmoid(
        jax.lax.dot_general(z, w2_ref[...], (((1,), (1,)), ((), ())),
                            preferred_element_type=jnp.float32))         # (nb, C)

    # Channel-wise scaling broadcast over the spatial lane axis; single lane-dense store.
    out_ref[...] = (x * s[:, :, None]).astype(out_ref.dtype)


# ----------------------------- block / VMEM planning -----------------------------

def _pick_batch_block(n, c, hw, io_itemsize, vmem_budget_bytes=28 << 20):
    """Largest nb that divides n, keeps >=2 grid steps when n>=2 (v7x megacore),
    and keeps double-buffered x+out blocks under the VMEM budget."""
    for cand in range(n, 0, -1):
        if n % cand:
            continue
        if n >= 2 and (n // cand) < 2:
            continue  # keep >= 2 grid steps so "parallel" can use both v7x TensorCores
        if 2 * 2 * cand * c * hw * io_itemsize > vmem_budget_bytes:
            continue
        return cand
    return 1


def _vmem_limit_bytes(nb, c, hw, io_itemsize, const_bytes):
    xio = 2 * 2 * nb * c * hw * io_itemsize      # double-buffered x + out blocks
    need = xio + const_bytes + (2 << 20)         # single-buffered invariants + headroom
    return int(min(max(need, 32 << 20), 64 << 20))


# ----------------------------- builder / forward -----------------------------

def build_msa(dct_filter, h, w, dct_h, dct_w):
    """Precompute the folded pool+DCT weight once (host einsum + one H2D transfer) and
    return a jitted forward(x_nchw, w1, w2)."""
    W = jnp.asarray(folded_dct_pool_weight(np.asarray(dct_filter), h, w, dct_h, dct_w))

    @jax.jit
    def forward(x_nchw, w1, w2):
        n, c, hh, ww = x_nchw.shape
        hw = hh * ww
        io_itemsize = jnp.dtype(x_nchw.dtype).itemsize

        # NCHW -> (N, C, H*W): pure reshape, no data movement.
        x_flat = x_nchw.reshape(n, c, hw)

        nb = _pick_batch_block(n, c, hw, io_itemsize)
        const_bytes = (W.size + w1.size + w2.size) * 4
        vmem_limit = _vmem_limit_bytes(nb, c, hw, io_itemsize, const_bytes)

        invariant = dict(pipeline_mode=pl.Buffered(1))  # constant block index -> 1 buffer

        out_flat = pl.pallas_call(
            msa_kernel,
            out_shape=jax.ShapeDtypeStruct((n, c, hw), x_nchw.dtype),
            grid=(n // nb,),
            in_specs=[
                pl.BlockSpec((nb, c, hw), lambda i: (i, 0, 0)),       # per-step batch block
                pl.BlockSpec((c, hw), lambda i: (0, 0), **invariant),  # grid-invariant W
                pl.BlockSpec(w1.shape, lambda i: (0, 0), **invariant),
                pl.BlockSpec(w2.shape, lambda i: (0, 0), **invariant),
            ],
            out_specs=pl.BlockSpec((nb, c, hw), lambda i: (i, 0, 0)),
            compiler_params=pltpu.CompilerParams(
                dimension_semantics=("parallel",),   # batch blocks across v7x's 2 TCs
                vmem_limit_bytes=vmem_limit,
            ),
        )(x_flat, W, w1, w2)

        # (N, C, H*W) -> NCHW: pure reshape.
        return out_flat.reshape(n, c, hh, ww)

    return forward


# ----------------------------- pure-JAX reference (mirrors the PyTorch module) -----------------------------

def reference_forward(x_nchw, dct_filter, w1, w2, dct_h, dct_w):
    n, c, h, w = x_nchw.shape
    ph = jnp.asarray(adaptive_pool_matrix(h, dct_h))
    pw = jnp.asarray(adaptive_pool_matrix(w, dct_w))
    x_pooled = jnp.einsum("ph,nchw,qw->ncpq", ph, x_nchw, pw)           # adaptive_avg_pool2d
    y = jnp.sum(x_pooled * jnp.asarray(dct_filter)[None], axis=(2, 3))   # (N, C)
    z = jnp.maximum(y @ w1.T, 0.0)                                       # Linear(C -> C/r)
    s = jax.nn.sigmoid(z @ w2.T)                                         # Linear(C/r -> C)
    return x_nchw * s[:, :, None, None]


# ----------------------------- main -----------------------------

if __name__ == "__main__":
    # module config (channel must be divisible by the 16 frequencies of 'top16' and by reduction)
    batch, channel, height, width = 2, 64, 16, 16
    dct_h, dct_w, reduction = 7, 7, 16
    c_red = channel // reduction

    mapper_x, mapper_y = get_freq_indices("top16")
    dct_filter = get_dct_filter(dct_h, dct_w, mapper_x, mapper_y, channel)

    key = jax.random.PRNGKey(0)
    kx, k1, k2 = jax.random.split(key, 3)
    x = jax.random.normal(kx, (batch, channel, height, width), dtype=jnp.float32)
    # nn.Linear weights in native PyTorch layout: (out_features, in_features), no bias.
    w1 = (jax.random.normal(k1, (c_red, channel), dtype=jnp.float32)
          * (1.0 / math.sqrt(channel)))
    w2 = (jax.random.normal(k2, (channel, c_red), dtype=jnp.float32)
          * (1.0 / math.sqrt(c_red)))

    msa = build_msa(dct_filter, height, width, dct_h, dct_w)   # W built + shipped once

    # f32 path: must match the module reference tightly.
    out = jax.block_until_ready(msa(x, w1, w2))
    ref = jax.block_until_ready(reference_forward(x, dct_filter, w1, w2, dct_h, dct_w))
    assert out.shape == (batch, channel, height, width)
    np.testing.assert_allclose(np.asarray(out), np.asarray(ref), rtol=1e-5, atol=1e-5)

    # bf16 I/O path (halves HBM read+write for this bandwidth-bound op); reduce/fc stay f32.
    out_bf16 = jax.block_until_ready(msa(x.astype(jnp.bfloat16), w1, w2))
    assert out_bf16.dtype == jnp.bfloat16
    np.testing.assert_allclose(np.asarray(out_bf16, dtype=np.float32), np.asarray(ref),
                               rtol=5e-2, atol=5e-2)

    print("KERNEL_OK")
</pallas_src>

<mosaic_0001>
module attributes {stable_mosaic.version = 11 : i64} {
  func.func @msa_kernel(%arg0: i32, %arg1: memref<1x64x256xf32, #tpu.memory_space<vmem>>, %arg2: memref<64x256xf32, #tpu.memory_space<vmem>>, %arg3: memref<4x64xf32, #tpu.memory_space<vmem>>, %arg4: memref<64x4xf32, #tpu.memory_space<vmem>>, %arg5: memref<1x64x256xf32, #tpu.memory_space<vmem>>) attributes {dimension_semantics = [#tpu.dimension_semantics<parallel>], iteration_bounds = array<i64: 2>, scalar_prefetch = 0 : i64, scratch_operands = 0 : i64, tpu.core_type = #tpu.core_type<tc>, window_params = [{transform_indices = @transform_0, window_bounds = array<i64: 1, 64, 256>}, {pipeline_mode = #tpu.pipeline_mode<synchronous>, transform_indices = @transform_1, window_bounds = array<i64: 64, 256>}, {pipeline_mode = #tpu.pipeline_mode<synchronous>, transform_indices = @transform_2, window_bounds = array<i64: 4, 64>}, {pipeline_mode = #tpu.pipeline_mode<synchronous>, transform_indices = @transform_3, window_bounds = array<i64: 64, 4>}, {transform_indices = @transform_4, window_bounds = array<i64: 1, 64, 256>}]} {
    %c0 = arith.constant 0 : index
    %c0_0 = arith.constant 0 : index
    %c0_1 = arith.constant 0 : index
    %0 = vector.load %arg1[%c0, %c0_0, %c0_1] : memref<1x64x256xf32, #tpu.memory_space<vmem>>, vector<1x64x256xf32>
    %c0_2 = arith.constant 0 : index
    %c0_3 = arith.constant 0 : index
    %1 = vector.load %arg2[%c0_2, %c0_3] : memref<64x256xf32, #tpu.memory_space<vmem>>, vector<64x256xf32>
    %2 = vector.shape_cast %1 : vector<64x256xf32> to vector<1x64x256xf32>
    %3 = arith.mulf %0, %2 : vector<1x64x256xf32>
    %cst = arith.constant dense<0.000000e+00> : vector<1x64xf32>
    %4 = vector.multi_reduction <add>, %3, %cst [2] : vector<1x64x256xf32> to vector<1x64xf32>
    %c0_4 = arith.constant 0 : index
    %c0_5 = arith.constant 0 : index
    %5 = vector.load %arg3[%c0_4, %c0_5] : memref<4x64xf32, #tpu.memory_space<vmem>>, vector<4x64xf32>
    %cst_6 = arith.constant dense<0.000000e+00> : vector<1x4xf32>
    %6 = tpu.matmul %4, %5, %cst_6 {dimension_numbers = #tpu.dot_dimension_numbers<[1], [1], [0], [0], [0, 0, 1, 0], [], []>} : vector<1x64xf32>, vector<4x64xf32>, vector<1x4xf32> -> vector<1x4xf32>
    %cst_7 = arith.constant 0.000000e+00 : f32
    %7 = vector.broadcast %cst_7 : f32 to vector<1x4xf32>
    %8 = arith.maximumf %6, %7 : vector<1x4xf32>
    %c0_8 = arith.constant 0 : index
    %c0_9 = arith.constant 0 : index
    %9 = vector.load %arg4[%c0_8, %c0_9] : memref<64x4xf32, #tpu.memory_space<vmem>>, vector<64x4xf32>
    %cst_10 = arith.constant dense<0.000000e+00> : vector<1x64xf32>
    %10 = tpu.matmul %8, %9, %cst_10 {dimension_numbers = #tpu.dot_dimension_numbers<[1], [1], [0], [0], [0, 0, 1, 0], [], []>} : vector<1x4xf32>, vector<64x4xf32>, vector<1x64xf32> -> vector<1x64xf32>
    %11 = arith.negf %10 : vector<1x64xf32>
    %12 = math.exp %11 : vector<1x64xf32>
    %cst_11 = arith.constant 1.000000e+00 : f32
    %13 = vector.broadcast %cst_11 : f32 to vector<1x64xf32>
    %14 = arith.addf %13, %12 : vector<1x64xf32>
    %15 = arith.divf %13, %14 : vector<1x64xf32>
    %16 = vector.shape_cast %15 : vector<1x64xf32> to vector<1x64x1xf32>
    %17 = vector.broadcast %16 : vector<1x64x1xf32> to vector<1x64x256xf32>
    %18 = arith.mulf %0, %17 : vector<1x64x256xf32>
    %c0_12 = arith.constant 0 : index
    %c0_13 = arith.constant 0 : index
    %c0_14 = arith.constant 0 : index
    %19 = vector.load %arg5[%c0_12, %c0_13, %c0_14] : memref<1x64x256xf32, #tpu.memory_space<vmem>>, vector<1x64x256xf32>
    tpu.vector_store %arg5[%c0_12, %c0_13, %c0_14], %18 {strides = array<i32>} : memref<1x64x256xf32, #tpu.memory_space<vmem>>, vector<1x64x256xf32>,
    return
  }
  func.func @transform_0(%arg0: i32) -> (i32, i32, i32) {
    %c0_i32 = arith.constant 0 : i32
    %c0_i32_0 = arith.constant 0 : i32
    %c0_i32_1 = arith.constant 0 : i32
    return %arg0, %c0_i32, %c0_i32_0 : i32, i32, i32
  }
  func.func @transform_1(%arg0: i32) -> (i32, i32) {
    %c0_i32 = arith.constant 0 : i32
    %c0_i32_0 = arith.constant 0 : i32
    %c0_i32_1 = arith.constant 0 : i32
    return %c0_i32, %c0_i32_0 : i32, i32
  }
  func.func @transform_2(%arg0: i32) -> (i32, i32) {
    %c0_i32 = arith.constant 0 : i32
    %c0_i32_0 = arith.constant 0 : i32
    %c0_i32_1 = arith.constant 0 : i32
    return %c0_i32, %c0_i32_0 : i32, i32
  }
  func.func @transform_3(%arg0: i32) -> (i32, i32) {
    %c0_i32 = arith.constant 0 : i32
    %c0_i32_0 = arith.constant 0 : i32
    %c0_i32_1 = arith.constant 0 : i32
    return %c0_i32, %c0_i32_0 : i32, i32
  }
  func.func @transform_4(%arg0: i32) -> (i32, i32, i32) {
    %c0_i32 = arith.constant 0 : i32
    %c0_i32_0 = arith.constant 0 : i32
    %c0_i32_1 = arith.constant 0 : i32
    return %arg0, %c0_i32, %c0_i32_0 : i32, i32, i32
  }
}

</mosaic_0001>

<bundles_post_ra>
// kernel: forward.1
= control target key start
LH: loop header
LB: loop body
LE: loop exit
PB: predicated region body
PF: predicated region fallthrough
CT: control target
= control target key end

     0   :  { %s627_s15 = smov 0   ;;  %s837_s0 = inlined_call_operand.vmem [shape: f32[2,64,256], index: 0, kind: input, shape index: {}]   ;;  %s838_s1 = inlined_call_operand.vmem [shape: f32[64,256], index: 1, kind: input, shape index: {}]   ;;  %s839_s2 = inlined_call_operand.vmem [shape: f32[4,64], index: 2, kind: input, shape index: {}]   ;;  %s840_s3 = inlined_call_operand.vmem [shape: f32[64,4], index: 3, kind: input, shape index: {}]   ;;  %s841_s4 = inlined_call_operand.vmem [shape: f32[2,64,256], index: 4, kind: output, shape index: {}]  }
   0x1 LB: > { %s548_s16 = sadd.s32 4294967295, %s600_s15   ;;  %p552_p0 = scmp.ge.s32.totalorder %s600_s15, 1  ;;  %s600_s15 = sphi %s627_s15, %s14_s15  }
   0x2   : > { %p162_p1 = scmp.lt.s32.totalorder %s600_s15, 3 }
   0x4   : > { %p163_p2 = pnand %p552_p0, %p162_p1 }
   0x5   : > { %p188_p3 = scmp.lt.s32.totalorder (!%p163_p2), %s548_s16, 1 }
   0x6   : > { %166 = sbr.rel (%p163_p2) target bundleno = 590 (0x24e), region = 36 }
   0xb   : > { %s843_s16 = smov (!%p188_p3, %s548_s16), 1  ;;  %v214_v0 = vld [vmem:[%s838_s1] sm:$0xff]  ;;  %v215_v1 = vld [vmem:[%s838_s1 + $0x8] sm:$0xff]  ;;  %v216_v9 = vld [vmem:[%s838_s1 + $0x10] sm:$0xff]  ;;  %vm310_vm0 = vcmask 523264   ;;  %vm345_vm1 = vcmask 31744   ;;  %v279_v60 = vlaneseq }
   0xc   : > { %s571_s17 = sshll.u32 %s843_s16, 7  ;;  %v218_v2 = vld [vmem:[%s838_s1 + $0x20] sm:$0xff]  ;;  %v219_v3 = vld [vmem:[%s838_s1 + $0x28] sm:$0xff]  ;;  %v217_v10 = vld [vmem:[%s838_s1 + $0x18] sm:$0xff]  ;;  %vm284_vm2 = vcmask 130112   ;;  %vm288_vm3 = vcmask 195712  }
   0xd   : > { %s652_s26 = scalar_lea.vmem %s837_s0, %s571_s17  ;;  %v222_v4 = vld [vmem:[%s838_s1 + $0x40] sm:$0xff]  ;;  %v223_v5 = vld [vmem:[%s838_s1 + $0x48] sm:$0xff]  ;;  %v220_v11 = vld [vmem:[%s838_s1 + $0x30] sm:$0xff]  ;;  %vm292_vm4 = vcmask 261312   ;;  %vm296_vm5 = vcmask 326912   ;;  %vm300_vm6 = vcmask 392512   ;;  %s800_s28 = scalar_lea.vmem %s841_s4, %s571_s17 }
   0xe   : > { %v664_v6 = vld [vmem:[%s652_s26] sm:$0xff]  ;;  %v667_v7 = vld [vmem:[%s652_s26 + $0x8] sm:$0xff]  ;;  %v221_v18 = vld [vmem:[%s838_s1 + $0x38] sm:$0xff]  ;;  %vm304_vm7 = vcmask 458112   ;;  %vm308_vm8 = vcmask 523712  }
   0xf   : > { %v670_v8 = vld [vmem:[%s652_s26 + $0x20] sm:$0xff]  ;;  %v230_v12 = vmul.f32 %v214_v0, %v664_v6  ;;  %v231_v13 = vmul.f32 %v215_v1, %v667_v7  ;;  %v684_v14 = vld [vmem:[%s652_s26 + $0x28] sm:$0xff]  ;;  %v224_v19 = vld [vmem:[%s838_s1 + $0x50] sm:$0xff]  ;;  %v280_v1 = vand.u32 127, %v279_v60 }
  0x10   : > { %v234_v15 = vmul.f32 %v218_v2, %v670_v8  ;;  %v688_v16 = vld [vmem:[%s652_s26 + $0x40] sm:$0xff]  ;;  %v691_v17 = vld [vmem:[%s652_s26 + $0x48] sm:$0xff]  ;;  %v225_v20 = vld [vmem:[%s838_s1 + $0x58] sm:$0xff]  ;;  %v235_v21 = vmul.f32 %v219_v3, %v684_v14 }
  0x11   : > { %v238_v22 = vmul.f32 %v222_v4, %v688_v16  ;;  %v239_v23 = vmul.f32 %v223_v5, %v691_v17  ;;  %v706_v24 = vld [vmem:[%s652_s26 + $0x10] sm:$0xff]  ;;  %v709_v25 = vld [vmem:[%s652_s26 + $0x18] sm:$0xff]  ;;  %v246_v27 = vadd.f32 %v231_v13, %v230_v12  ;;  %v226_v40 = vld [vmem:[%s838_s1 + $0x60] sm:$0xff]  ;;  %v282_v3 = vadd.s32 4294967288, %v280_v1 }
  0x12   : > { %v712_v26 = vld [vmem:[%s652_s26 + $0x30] sm:$0xff]  ;;  %v715_v28 = vld [vmem:[%s652_s26 + $0x38] sm:$0xff]  ;;  %v252_v31 = vadd.f32 %v235_v21, %v234_v15  ;;  %v232_v33 = vmul.f32 %v216_v9, %v706_v24  ;;  %v233_v34 = vmul.f32 %v217_v10, %v709_v25  ;;  %v227_v41 = vld [vmem:[%s838_s1 + $0x68] sm:$0xff]  ;;  %v286_v4 = vadd.s32 4294967280, %v280_v1 }
  0x13   : > { %v718_v29 = vld [vmem:[%s652_s26 + $0x50] sm:$0xff]  ;;  %v721_v30 = vld [vmem:[%s652_s26 + $0x58] sm:$0xff]  ;;  %v258_v32 = vadd.f32 %v239_v23, %v238_v22  ;;  %247 = vadd.xlane.f32.xlu0 %v246_v27  ;;  %v236_v35 = vmul.f32 %v220_v11, %v712_v26  ;;  %v237_v36 = vmul.f32 %v221_v18, %v715_v28  ;;  %v736_v44 = vld [vmem:[%s652_s26 + $0x60] sm:$0xff]  ;;  %v290_v5 = vadd.s32 4294967272, %v280_v1 }
  0x14   : > { %253 = vadd.xlane.f32.xlu1 %v252_v31  ;;  %v240_v37 = vmul.f32 %v224_v19, %v718_v29  ;;  %v241_v38 = vmul.f32 %v225_v20, %v721_v30  ;;  %v249_v39 = vadd.f32 %v233_v34, %v232_v33  ;;  %v739_v45 = vld [vmem:[%s652_s26 + $0x68] sm:$0xff]  ;;  %v228_v46 = vld [vmem:[%s838_s1 + $0x70] sm:$0xff]  ;;  %v748_v48 = vld [vmem:[%s652_s26 + $0x78] sm:$0xff]  ;;  %v242_v50 = vmul.f32 %v226_v40, %v736_v44 }
  0x15   : > { %259 = vadd.xlane.f32.xlu2 %v258_v32  ;;  %v255_v42 = vadd.f32 %v237_v36, %v236_v35  ;;  %v745_v47 = vld [vmem:[%s652_s26 + $0x70] sm:$0xff]  ;;  %v229_v49 = vld [vmem:[%s838_s1 + $0x78] sm:$0xff]  ;;  %v243_v51 = vmul.f32 %v227_v41, %v739_v45  ;;  %v270_v56 = vld [vmem:[%s839_s2] sm:$0xf]  ;;  %v294_v12 = vadd.s32 4294967264, %v280_v1  ;;  %v298_v20 = vadd.s32 4294967256, %v280_v1 }
  0x16   : > { %v261_v43 = vadd.f32 %v241_v38, %v240_v37  ;;  %v244_v52 = vmul.f32 %v228_v46, %v745_v47  ;;  %v245_v53 = vmul.f32 %v229_v49, %v748_v48  ;;  %557 = vmatpush.xpose.msk.msra.mxu0 %vm310_vm0, %v270_v56  ;;  %v344_v57 = vld [vmem:[%s840_s3 + $0x38] sm:$0xff]  ;;  %v343_v58 = vld [vmem:[%s840_s3 + $0x30] sm:$0xff]  ;;  %v342_v59 = vld [vmem:[%s840_s3 + $0x28] sm:$0xff]  ;;  %v302_v33 = vadd.s32 4294967248, %v280_v1 }
  0x17   : > { %v264_v54 = vadd.f32 %v243_v51, %v242_v50  ;;  %559 = vmatpush.xpose.msk.msra.mxu1 %vm345_vm1, %v344_v57  ;;  %v341_v61 = vld [vmem:[%s840_s3 + $0x20] sm:$0xff]  ;;  %v340_v2 = vld [vmem:[%s840_s3 + $0x18] sm:$0xff]  ;;  %v339_v9 = vld [vmem:[%s840_s3 + $0x10] sm:$0xff]  ;;  %v306_v35 = vadd.s32 4294967240, %v280_v1  ;;  %v414_v51 = vshrl.u32 %v279_v60, 7 }
  0x18   : > { %v267_v55 = vadd.f32 %v245_v53, %v244_v52  ;;  %v338_v23 = vld [vmem:[%s840_s3 + $0x8] sm:$0xff]  ;;  %v337_v46 = vld [vmem:[%s840_s3] sm:$0xff] }
  0x19   : > { %581 = vset.pattern.permute.xlu2 %v414_v51  ;;  %v427_v52 = vadd.s32 16, %v414_v51  ;;  %v421_v53 = vadd.s32 8, %v414_v51 }
  0x1b   : > { %250 = vadd.xlane.f32.xlu0 %v249_v39  ;;  %560 = vmatpush.xpose.msk.msra.mxu1 %vm345_vm1, %v343_v58 }
  0x1c   : > { %256 = vadd.xlane.f32.xlu1 %v255_v42  ;;  %582 = vset.pattern.permute.xlu0 %v421_v53 }
  0x1d   : > { %262 = vadd.xlane.f32.xlu2 %v261_v43  ;;  %583 = vset.pattern.permute.xlu1 %v427_v52 }
  0x1f   : > { %561 = vmatpush.xpose.msk.msra.mxu1 %vm345_vm1, %v342_v59 }
  0x23   : > { %265 = vadd.xlane.f32.xlu0 %v264_v54  ;;  %562 = vmatpush.xpose.msk.msra.mxu1 %vm345_vm1, %v341_v61 }
  0x24   : > { %268 = vadd.xlane.f32.xlu1 %v267_v55 }
  0x27   : > { %563 = vmatpush.xpose.msk.msra.mxu1 %vm345_vm1, %v340_v2 }
  0x2b   : > { %564 = vmatpush.xpose.msk.msra.mxu1 %vm345_vm1, %v339_v9  ;;  %v433_v9 = vadd.s32 24, %v414_v51 }
  0x2f   : > { %565 = vmatpush.xpose.msk.msra.mxu1 %vm345_vm1, %v338_v23 }
  0x33   : > { %566 = vmatpush.xpose.msk.msra.mxu1 %vm345_vm1, %v337_v46 }
  0x86   : > { %v248_v62 = vpop.xlane.xlu0 %247 }
  0x87   : > { %v254_v63 = vpop.xlane.xlu1 %253  ;;  %v281_v11 = vperm.slane %v248_v62, %v280_v1 }
  0x88   : > { %v260_v0 = vpop.xlane.xlu2 %259  ;;  %v287_v18 = vperm.slane %v254_v63, %v286_v4 }
  0x89   : > { %v295_v31 = vperm.slane %v260_v0, %v294_v12  ;;  %v451_v12 = vadd.s32 48, %v414_v51 }
  0x8e   : > { %v251_v10 = vpop.xlane.xlu0 %250 }
  0x8f   : > { %v283_v13 = vperm.slane %v251_v10, %v282_v3  ;;  %v257_v15 = vpop.xlane.xlu1 %256  ;;  %v457_v10 = vadd.s32 56, %v414_v51 }
  0x90   : > { %v291_v19 = vperm.slane %v257_v15, %v290_v5  ;;  %v263_v22 = vpop.xlane.xlu2 %262  ;;  %v445_v5 = vadd.s32 40, %v414_v51 }
  0x91   : > { %v285_v21 = vsel %vm284_vm2, %v283_v13, %v281_v11  ;;  %v299_v34 = vperm.slane %v263_v22, %v298_v20  ;;  %v439_v11 = vadd.s32 32, %v414_v51 }
  0x92   : > { %v289_v27 = vsel %vm288_vm3, %v287_v18, %v285_v21 }
  0x93   : > { %v293_v32 = vsel %vm292_vm4, %v291_v19, %v289_v27 }
  0x94   : > { %v297_v36 = vsel %vm296_vm5, %v295_v31, %v293_v32 }
  0x95   : > { %v301_v40 = vsel %vm300_vm6, %v299_v34, %v297_v36 }
  0x96   : > { %v266_v37 = vpop.xlane.xlu0 %265 }
  0x97   : > { %v303_v38 = vperm.slane %v266_v37, %v302_v33  ;;  %v269_v39 = vpop.xlane.xlu1 %268 }
  0x98   : > { %v307_v41 = vperm.slane %v269_v39, %v306_v35 }
  0x99   : > { %v305_v42 = vsel %vm304_vm7, %v303_v38, %v301_v40 }
  0x9a   : > { %v309_v43 = vsel %vm308_vm8, %v307_v41, %v305_v42 }
  0x9b   : > { %558 = vmatmul.msk.f32.vlgmr.msra.gmra.mxu0 %vm310_vm0, %v309_v43 }
 0x118   : > { %v333_v49 = vpop.f32.mrf.mxu0 }
 0x119   : > { %v336_v50 = vmax.f32 %v333_v49, 0.0 }
 0x11b   : > { %567 = vmatmul.msk.f32.vlgmr.msra.gmra.mxu1 %vm345_vm1, %v336_v50 }
 0x198   : > { %v390_v54 = vpop.f32.mrf.mxu1 }
 0x199   : > { %v568_v55 = vmul.f32 -1.442695, %v390_v54 }
 0x19b   : > { %590 = vpow2.f32 %v568_v55 }
 0x1a1   : > { %v591_v56 = vpop.eup %590 }
 0x1a2   : > { %v396_v57 = vadd.f32 1.0, %v591_v56 }
 0x1a4   : > { %592 = vrcp.f32 %v396_v57  ;;  %v408_v62 = vand.u32 2147483648, %v396_v57  ;;  %v406_v0 = vand.u32 2147483647, %v396_v57  ;;  %vm402_vm10 = vweird.f32 %v396_v57 }
 0x1a6   : > { %v409_v60 = vor.u32 1.1754944e-38, %v408_v62  ;;  %vm407_vm12 = vcmp.eq.f32.partialorder %v406_v0, 8.507059e+37 }
 0x1aa   : > { %v593_v58 = vpop.eup %592 }
 0x1ab   : > { %v398_v59 = vmul.f32 %v593_v58, %v396_v57  ;;  %vm403_vm9 = vweird.f32 %v593_v58 }
 0x1ac   : > { %vm404_vm11 = vmor %vm402_vm10, %vm403_vm9 }
 0x1ad   : > { %v399_v61 = vsub.f32 1.0, %v398_v59 }
 0x1af   : > { %v400_v63 = vmul.f32 %v593_v58, %v399_v61 }
 0x1b1   : > { %v401_v1 = vadd.f32 %v593_v58, %v400_v63 }
 0x1b3   : > { %v405_v2 = vsel %vm404_vm11, %v593_v58, %v401_v1 }
 0x1b4   : > { %v410_v3 = vsel %vm407_vm12, %v409_v60, %v405_v2 }
 0x1b5   : > { %v412_v4 = vperm.slane %v410_v3, 0 }
 0x1b7   : > { %429 = vperm.xlu1 %583, %v412_v4   ;;  %423 = vperm.xlu0 %582, %v412_v4  }
 0x1b8   : > { %417 = vperm.xlu2 %581, %v412_v4  }
 0x1bf   : > { %586 = vset.pattern.permute.xlu1 %v445_v5  ;;  %589 = vset.pattern.permute.xlu0 %v457_v10 }
 0x1c0   : > { %584 = vset.pattern.permute.xlu2 %v433_v9 }
 0x1c7   : > { %447 = vperm.xlu1 %586, %v412_v4  }
 0x1c8   : > { %435 = vperm.xlu2 %584, %v412_v4  }
 0x1cf   : > { %588 = vset.pattern.permute.xlu1 %v457_v10 }
 0x1d0   : > { %585 = vset.pattern.permute.xlu2 %v439_v11 }
 0x1d7   : > { %459 = vperm.xlu1 %588, %v412_v4  }
 0x1d8   : > { %441 = vperm.xlu2 %585, %v412_v4  }
 0x1e0   : > { %587 = vset.pattern.permute.xlu2 %v451_v12 }
 0x1e8   : > { %453 = vperm.xlu2 %587, %v412_v4  }
 0x212   : > { %v418_v13 = vpop.permute.xlu2 %417 }
 0x213   : > { %v461_v15 = vmul.f32 %v418_v13, %v664_v6  ;;  %v462_v18 = vmul.f32 %v418_v13, %v667_v7 }
 0x215   : > { %477 = vst [vmem:[%s800_s28] sm:$0xff] %v461_v15 }
 0x216   : > { %478 = vst [vmem:[%s800_s28 + $0x8] sm:$0xff] %v462_v18 }
 0x222   : > { %v436_v19 = vpop.permute.xlu2 %435 }
 0x223   : > { %v467_v20 = vmul.f32 %v436_v19, %v712_v26  ;;  %v468_v21 = vmul.f32 %v436_v19, %v715_v28 }
 0x225   : > { %483 = vst [vmem:[%s800_s28 + $0x30] sm:$0xff] %v467_v20 }
 0x226   : > { %484 = vst [vmem:[%s800_s28 + $0x38] sm:$0xff] %v468_v21 }
 0x229   : > { %v430_v22 = vpop.permute.xlu1 %429  ;;  %v424_v23 = vpop.permute.xlu0 %423 }
 0x22a   : > { %v465_v6 = vmul.f32 %v430_v22, %v670_v8  ;;  %v466_v7 = vmul.f32 %v430_v22, %v684_v14  ;;  %v463_v27 = vmul.f32 %v424_v23, %v706_v24  ;;  %v464_v31 = vmul.f32 %v424_v23, %v709_v25 }
 0x22c   : > { %481 = vst [vmem:[%s800_s28 + $0x20] sm:$0xff] %v465_v6 }
 0x22d   : > { %482 = vst [vmem:[%s800_s28 + $0x28] sm:$0xff] %v466_v7 }
 0x22e   : > { %479 = vst [vmem:[%s800_s28 + $0x10] sm:$0xff] %v463_v27 }
 0x22f   : > { %480 = vst [vmem:[%s800_s28 + $0x18] sm:$0xff] %v464_v31 }
 0x232   : > { %v442_v26 = vpop.permute.xlu2 %441 }
 0x233   : > { %v469_v28 = vmul.f32 %v442_v26, %v688_v16  ;;  %v470_v32 = vmul.f32 %v442_v26, %v691_v17 }
 0x235   : > { %485 = vst [vmem:[%s800_s28 + $0x40] sm:$0xff] %v469_v28 }
 0x236   : > { %486 = vst [vmem:[%s800_s28 + $0x48] sm:$0xff] %v470_v32 }
 0x239   : > { %v448_v8 = vpop.permute.xlu1 %447 }
 0x23a   : > { %v471_v14 = vmul.f32 %v448_v8, %v718_v29  ;;  %v472_v24 = vmul.f32 %v448_v8, %v721_v30 }
 0x23c   : > { %487 = vst [vmem:[%s800_s28 + $0x50] sm:$0xff] %v471_v14 }
 0x23d   : > { %488 = vst [vmem:[%s800_s28 + $0x58] sm:$0xff] %v472_v24 }
 0x242   : > { %v454_v25 = vpop.permute.xlu2 %453 }
 0x243   : > { %v473_v33 = vmul.f32 %v454_v25, %v736_v44  ;;  %v474_v34 = vmul.f32 %v454_v25, %v739_v45 }
 0x245   : > { %489 = vst [vmem:[%s800_s28 + $0x60] sm:$0xff] %v473_v33 }
 0x246   : > { %490 = vst [vmem:[%s800_s28 + $0x68] sm:$0xff] %v474_v34 }
 0x249   : > { %v460_v16 = vpop.permute.xlu1 %459 }
 0x24a   : > { %v475_v17 = vmul.f32 %v460_v16, %v745_v47  ;;  %v476_v35 = vmul.f32 %v460_v16, %v748_v48 }
 0x24c   : > { %491 = vst [vmem:[%s800_s28 + $0x70] sm:$0xff] %v475_v17 }
 0x24d   : > { %492 = vst [vmem:[%s800_s28 + $0x78] sm:$0xff] %v476_v35 }
 0x24e PF: > { %s14_s15 = sadd.s32 1, %s600_s15  }
 0x24f   : > { %p11_p4 = scmp.ge.s32.totalorder %s14_s15, 4  }
 0x251   :  { %13 = sbr.rel (!%p11_p4) target bundleno = 1 (0x1), region = 66 }

</bundles_post_ra>
